<compile_context>
chip_gen: v5e
topology: v5e:2x2
jax: 0.10.0
libtpu: 0.0.40
codegen_flags: <defaults>
</compile_context>

<pallas_src>
import functools

import jax
import jax.numpy as jnp
from jax.experimental import pallas as pl
from jax.experimental.pallas import tpu as pltpu


def _gbn_kernel(x_ref, w_ref, b_ref, o_ref, *, eps, hw, cg, inv_l, inv_lm1):
    # x_ref: (tR, L)   w_ref/b_ref: (tR, Cg)   o_ref: (tR, L),  L = Cg*HW
    x = x_ref[...].astype(jnp.float32)

    # Per-row (per batch*group) statistics, two-pass (numerically stable).
    mean = jnp.sum(x, axis=-1, keepdims=True) * jnp.float32(inv_l)        # (tR, 1)
    d = x - mean
    var = jnp.sum(d * d, axis=-1, keepdims=True) * jnp.float32(inv_lm1)   # unbiased
    std = jnp.sqrt(var)
    inv = pl.reciprocal(std + jnp.float32(eps), approx=False)             # (tR, 1)

    # Fold stats + per-channel affine into one scale/shift per (row, channel).
    w = w_ref[...].astype(jnp.float32)                                    # (tR, Cg)
    b = b_ref[...].astype(jnp.float32)
    scale = w * inv                                                       # (tR, Cg)
    shift = b - mean * scale                                              # (tR, Cg)

    # Single FMA write pass, one contiguous HW span per channel of the group.
    for c in range(cg):
        xs = x_ref[:, pl.ds(c * hw, hw)].astype(jnp.float32)
        o_ref[:, pl.ds(c * hw, hw)] = (
            xs * scale[:, c:c + 1] + shift[:, c:c + 1]
        ).astype(o_ref.dtype)


def _choose_row_tile(num_rows, row_len, itemsize):
    """Pick a row tile: multiple of 8, ~2 MiB x-block, >=2 grid steps if possible."""
    if num_rows <= 8:
        return num_rows
    target_rows = max(1, (2 * 1024 * 1024) // (row_len * itemsize))
    rows = max(8, (target_rows // 8) * 8)
    if num_rows >= 16:
        cap = max(8, ((num_rows // 2) // 8) * 8)   # keep >=2 parallel steps (v7x)
    else:
        cap = 8
    return min(rows, cap)


def group_batchnorm_2d(x, weight, bias, group_num=16, eps=1e-10):
    """x: (N, C, H, W), weight/bias: (C, 1, 1). Returns (N, C, H, W)."""
    N, C, H, W = x.shape
    G = group_num
    assert C >= G and C % G == 0
    Cg = C // G
    HW = H * W
    L = Cg * HW
    assert L > 1, "group size must be > 1 for unbiased std"
    NG = N * G
    itemsize = jnp.dtype(x.dtype).itemsize

    # Row view: one row per (batch, group).
    x_rows = x.reshape(NG, L)

    # Compact per-row channel params: (NG, Cg) == N*C elements (tiny).
    w_rows = jnp.tile(jnp.reshape(weight, (G, Cg)), (N, 1))
    b_rows = jnp.tile(jnp.reshape(bias, (G, Cg)), (N, 1))

    tR = _choose_row_tile(NG, L, itemsize)
    grid = (pl.cdiv(NG, tR),)

    kernel = functools.partial(
        _gbn_kernel,
        eps=float(eps),
        hw=HW,
        cg=Cg,
        inv_l=1.0 / L,
        inv_lm1=1.0 / (L - 1),
    )

    total = N * C * H * W
    cost = pl.CostEstimate(
        flops=7 * total,
        transcendentals=2 * NG,
        bytes_accessed=int(2 * total * itemsize + 2 * NG * Cg * itemsize),
    )

    out = pl.pallas_call(
        kernel,
        out_shape=jax.ShapeDtypeStruct((NG, L), x.dtype),
        grid_spec=pltpu.PrefetchScalarGridSpec(
            num_scalar_prefetch=0,
            grid=grid,
            in_specs=[
                pl.BlockSpec((tR, L), lambda i: (i, 0)),
                pl.BlockSpec((tR, Cg), lambda i: (i, 0)),
                pl.BlockSpec((tR, Cg), lambda i: (i, 0)),
            ],
            out_specs=pl.BlockSpec((tR, L), lambda i: (i, 0)),
        ),
        compiler_params=pltpu.CompilerParams(
            dimension_semantics=("parallel",),
            vmem_limit_bytes=32 * 1024 * 1024,
        ),
        cost_estimate=cost,
    )(x_rows, w_rows, b_rows)

    return out.reshape(N, C, H, W)


def _reference(x, weight, bias, group_num, eps):
    N, C, H, W = x.shape
    xg = x.reshape(N, group_num, -1)
    mean = jnp.mean(xg, axis=2, keepdims=True)
    var = jnp.sum((xg - mean) ** 2, axis=2, keepdims=True) / (xg.shape[2] - 1)
    std = jnp.sqrt(var)
    xn = ((xg - mean) / (std + eps)).reshape(N, C, H, W)
    return xn * weight + bias


if __name__ == "__main__":
    key = jax.random.PRNGKey(0)
    N, C, H, W = 2, 16, 16, 16
    group_num = 4
    eps = 1e-10

    kx, kw = jax.random.split(key)
    x = jax.random.normal(kx, (N, C, H, W), dtype=jnp.float32)
    # Deterministic init mirroring nn.Parameter(torch.randn(C,1,1)) / zeros.
    weight = jax.random.normal(kw, (C, 1, 1), dtype=jnp.float32)
    bias = jnp.zeros((C, 1, 1), dtype=jnp.float32)

    out = group_batchnorm_2d(x, weight, bias, group_num=group_num, eps=eps)
    out = jax.block_until_ready(out)

    ref = _reference(x, weight, bias, group_num, eps)
    assert out.shape == (N, C, H, W)
    assert jnp.allclose(out, ref, atol=1e-4, rtol=1e-4)

    print("KERNEL_OK")
</pallas_src>

<mosaic_0001>
module attributes {stable_mosaic.version = 11 : i64} {
  func.func @_gbn_kernel(%arg0: i32, %arg1: memref<8x1024xf32, #tpu.memory_space<vmem>>, %arg2: memref<8x4xf32, #tpu.memory_space<vmem>>, %arg3: memref<8x4xf32, #tpu.memory_space<vmem>>, %arg4: memref<8x1024xf32, #tpu.memory_space<vmem>>) attributes {dimension_semantics = [#tpu.dimension_semantics<parallel>], iteration_bounds = array<i64: 1>, scalar_prefetch = 0 : i64, scratch_operands = 0 : i64, tpu.core_type = #tpu.core_type<tc>, window_params = [{transform_indices = @transform_0, window_bounds = array<i64: 8, 1024>}, {transform_indices = @transform_1, window_bounds = array<i64: 8, 4>}, {transform_indices = @transform_2, window_bounds = array<i64: 8, 4>}, {transform_indices = @transform_3, window_bounds = array<i64: 8, 1024>}]} {
    %c0 = arith.constant 0 : index
    %c0_0 = arith.constant 0 : index
    %0 = vector.load %arg1[%c0, %c0_0] : memref<8x1024xf32, #tpu.memory_space<vmem>>, vector<8x1024xf32>
    %cst = arith.constant dense<0.000000e+00> : vector<8xf32>
    %1 = vector.multi_reduction <add>, %0, %cst [1] : vector<8x1024xf32> to vector<8xf32>
    %2 = vector.shape_cast %1 : vector<8xf32> to vector<8x1xf32>
    %cst_1 = arith.constant 9.765625E-4 : f32
    %3 = vector.broadcast %cst_1 : f32 to vector<8x1xf32>
    %4 = arith.mulf %2, %3 : vector<8x1xf32>
    %5 = vector.broadcast %4 : vector<8x1xf32> to vector<8x1024xf32>
    %6 = arith.subf %0, %5 : vector<8x1024xf32>
    %7 = arith.mulf %6, %6 : vector<8x1024xf32>
    %cst_2 = arith.constant dense<0.000000e+00> : vector<8xf32>
    %8 = vector.multi_reduction <add>, %7, %cst_2 [1] : vector<8x1024xf32> to vector<8xf32>
    %9 = vector.shape_cast %8 : vector<8xf32> to vector<8x1xf32>
    %cst_3 = arith.constant 9.77517105E-4 : f32
    %10 = vector.broadcast %cst_3 : f32 to vector<8x1xf32>
    %11 = arith.mulf %9, %10 : vector<8x1xf32>
    %12 = math.sqrt %11 : vector<8x1xf32>
    %cst_4 = arith.constant 1.000000e-10 : f32
    %13 = vector.broadcast %cst_4 : f32 to vector<8x1xf32>
    %14 = arith.addf %12, %13 : vector<8x1xf32>
    %15 = tpu.reciprocal %14 : vector<8x1xf32> -> vector<8x1xf32>
    %c0_5 = arith.constant 0 : index
    %c0_6 = arith.constant 0 : index
    %16 = vector.load %arg2[%c0_5, %c0_6] : memref<8x4xf32, #tpu.memory_space<vmem>>, vector<8x4xf32>
    %c0_7 = arith.constant 0 : index
    %c0_8 = arith.constant 0 : index
    %17 = vector.load %arg3[%c0_7, %c0_8] : memref<8x4xf32, #tpu.memory_space<vmem>>, vector<8x4xf32>
    %18 = vector.broadcast %15 : vector<8x1xf32> to vector<8x4xf32>
    %19 = arith.mulf %16, %18 : vector<8x4xf32>
    %20 = vector.broadcast %4 : vector<8x1xf32> to vector<8x4xf32>
    %21 = arith.mulf %20, %19 : vector<8x4xf32>
    %22 = arith.subf %17, %21 : vector<8x4xf32>
    %c0_9 = arith.constant 0 : index
    %c0_10 = arith.constant 0 : index
    %23 = vector.load %arg1[%c0_9, %c0_10] : memref<8x1024xf32, #tpu.memory_space<vmem>>, vector<8x256xf32>
    %24 = vector.extract_strided_slice %19 {offsets = [0, 0], sizes = [8, 1], strides = [1, 1]} : vector<8x4xf32> to vector<8x1xf32>
    %25 = vector.broadcast %24 : vector<8x1xf32> to vector<8x256xf32>
    %26 = arith.mulf %23, %25 : vector<8x256xf32>
    %27 = vector.extract_strided_slice %22 {offsets = [0, 0], sizes = [8, 1], strides = [1, 1]} : vector<8x4xf32> to vector<8x1xf32>
    %28 = vector.broadcast %27 : vector<8x1xf32> to vector<8x256xf32>
    %29 = arith.addf %26, %28 : vector<8x256xf32>
    %c0_11 = arith.constant 0 : index
    %c0_12 = arith.constant 0 : index
    %30 = vector.load %arg4[%c0_11, %c0_12] : memref<8x1024xf32, #tpu.memory_space<vmem>>, vector<8x256xf32>
    tpu.vector_store %arg4[%c0_11, %c0_12], %29 {strides = array<i32>} : memref<8x1024xf32, #tpu.memory_space<vmem>>, vector<8x256xf32>,
    %c0_13 = arith.constant 0 : index
    %c256 = arith.constant 256 : index
    %31 = vector.load %arg1[%c0_13, %c256] : memref<8x1024xf32, #tpu.memory_space<vmem>>, vector<8x256xf32>
    %32 = vector.extract_strided_slice %19 {offsets = [0, 1], sizes = [8, 1], strides = [1, 1]} : vector<8x4xf32> to vector<8x1xf32>
    %33 = vector.broadcast %32 : vector<8x1xf32> to vector<8x256xf32>
    %34 = arith.mulf %31, %33 : vector<8x256xf32>
    %35 = vector.extract_strided_slice %22 {offsets = [0, 1], sizes = [8, 1], strides = [1, 1]} : vector<8x4xf32> to vector<8x1xf32>
    %36 = vector.broadcast %35 : vector<8x1xf32> to vector<8x256xf32>
    %37 = arith.addf %34, %36 : vector<8x256xf32>
    %c0_14 = arith.constant 0 : index
    %c256_15 = arith.constant 256 : index
    %38 = vector.load %arg4[%c0_14, %c256_15] : memref<8x1024xf32, #tpu.memory_space<vmem>>, vector<8x256xf32>
    tpu.vector_store %arg4[%c0_14, %c256_15], %37 {strides = array<i32>} : memref<8x1024xf32, #tpu.memory_space<vmem>>, vector<8x256xf32>,
    %c0_16 = arith.constant 0 : index
    %c512 = arith.constant 512 : index
    %39 = vector.load %arg1[%c0_16, %c512] : memref<8x1024xf32, #tpu.memory_space<vmem>>, vector<8x256xf32>
    %40 = vector.extract_strided_slice %19 {offsets = [0, 2], sizes = [8, 1], strides = [1, 1]} : vector<8x4xf32> to vector<8x1xf32>
    %41 = vector.broadcast %40 : vector<8x1xf32> to vector<8x256xf32>
    %42 = arith.mulf %39, %41 : vector<8x256xf32>
    %43 = vector.extract_strided_slice %22 {offsets = [0, 2], sizes = [8, 1], strides = [1, 1]} : vector<8x4xf32> to vector<8x1xf32>
    %44 = vector.broadcast %43 : vector<8x1xf32> to vector<8x256xf32>
    %45 = arith.addf %42, %44 : vector<8x256xf32>
    %c0_17 = arith.constant 0 : index
    %c512_18 = arith.constant 512 : index
    %46 = vector.load %arg4[%c0_17, %c512_18] : memref<8x1024xf32, #tpu.memory_space<vmem>>, vector<8x256xf32>
    tpu.vector_store %arg4[%c0_17, %c512_18], %45 {strides = array<i32>} : memref<8x1024xf32, #tpu.memory_space<vmem>>, vector<8x256xf32>,
    %c0_19 = arith.constant 0 : index
    %c768 = arith.constant 768 : index
    %47 = vector.load %arg1[%c0_19, %c768] : memref<8x1024xf32, #tpu.memory_space<vmem>>, vector<8x256xf32>
    %48 = vector.extract_strided_slice %19 {offsets = [0, 3], sizes = [8, 1], strides = [1, 1]} : vector<8x4xf32> to vector<8x1xf32>
    %49 = vector.broadcast %48 : vector<8x1xf32> to vector<8x256xf32>
    %50 = arith.mulf %47, %49 : vector<8x256xf32>
    %51 = vector.extract_strided_slice %22 {offsets = [0, 3], sizes = [8, 1], strides = [1, 1]} : vector<8x4xf32> to vector<8x1xf32>
    %52 = vector.broadcast %51 : vector<8x1xf32> to vector<8x256xf32>
    %53 = arith.addf %50, %52 : vector<8x256xf32>
    %c0_20 = arith.constant 0 : index
    %c768_21 = arith.constant 768 : index
    %54 = vector.load %arg4[%c0_20, %c768_21] : memref<8x1024xf32, #tpu.memory_space<vmem>>, vector<8x256xf32>
    tpu.vector_store %arg4[%c0_20, %c768_21], %53 {strides = array<i32>} : memref<8x1024xf32, #tpu.memory_space<vmem>>, vector<8x256xf32>,
    return
  }
  func.func @transform_0(%arg0: i32) -> (i32, i32) {
    %c0_i32 = arith.constant 0 : i32
    %c0_i32_0 = arith.constant 0 : i32
    return %arg0, %c0_i32 : i32, i32
  }
  func.func @transform_1(%arg0: i32) -> (i32, i32) {
    %c0_i32 = arith.constant 0 : i32
    %c0_i32_0 = arith.constant 0 : i32
    return %arg0, %c0_i32 : i32, i32
  }
  func.func @transform_2(%arg0: i32) -> (i32, i32) {
    %c0_i32 = arith.constant 0 : i32
    %c0_i32_0 = arith.constant 0 : i32
    return %arg0, %c0_i32 : i32, i32
  }
  func.func @transform_3(%arg0: i32) -> (i32, i32) {
    %c0_i32 = arith.constant 0 : i32
    %c0_i32_0 = arith.constant 0 : i32
    return %arg0, %c0_i32 : i32, i32
  }
}

</mosaic_0001>

<bundles_post_ra>
// kernel: tpu_custom_call.1
= control target key start
LH: loop header
LB: loop body
LE: loop exit
PB: predicated region body
PF: predicated region fallthrough
CT: control target
= control target key end

     0   :  { %8 = vsyncpa [#allocation3], 0  ;;  %s347_s0 = inlined_call_operand.hbm [shape: f32[8,1024], index: 0, kind: input, shape index: {}]   ;;  %s348_s1 = inlined_call_operand.vmem [shape: f32[8,4], index: 1, kind: input, shape index: {}]   ;;  %s349_s2 = inlined_call_operand.vmem [shape: f32[8,4], index: 2, kind: input, shape index: {}]   ;;  %s350_s3 = inlined_call_operand.hbm [shape: f32[8,1024], index: 3, kind: output, shape index: {}]  }
   0x1   :  { %9 = vsyncpa [#allocation4], 0  ;;  %s15_s14 = sshll.u32 %s347_s0, 4  ;;  %s258_s15 = smov [#allocation2]   ;;  %s16_s14 = int_to_ptr.hbm [resolvable:$true] %s15_s14 }
   0x2   :  { %s17_s16 = sshll.u32 %s258_s15, 4  ;;  %s18_s16 = int_to_ptr.vmem [resolvable:$true] %s17_s16 }
   0x3   :  { %20 = dma.hbm_to_vmem [thread:$0]  %s16_s14, 1024, %s18_s16, [#allocation3]  }
   0x4   :  { %254 = dma.done.wait [#allocation3], 1024  }
   0x5   :  { %255 = vsyncadd [#allocation3], 4294966272  ;;  %v287_v0 = vld [vmem:[#allocation2] sm:$0xff]  ;;  %v289_v1 = vld [vmem:[#allocation2 + $0x8] sm:$0xff]  ;;  %v259_v40 = vmov 2   ;;  %v260_v41 = vmov 0  }
   0x6   :  { %v291_v2 = vld [vmem:[#allocation2 + $0x10] sm:$0xff]  ;;  %v37_v3 = vadd.f32 %v289_v1, %v287_v0  ;;  %v295_v4 = vld [vmem:[#allocation2 + $0x18] sm:$0xff]  ;;  %v298_v6 = vld [vmem:[#allocation2 + $0x20] sm:$0xff]  ;;  %196 = vset.pattern.permute.xlu2 %v259_v40  ;;  %194 = vset.pattern.permute.xlu1 %v260_v41  ;;  %s178_s22 = sshll.u32 %s350_s3, 4  ;;  %s179_s22 = int_to_ptr.hbm [resolvable:$true] %s178_s22 }
   0x7   :  { %v301_v8 = vld [vmem:[#allocation2 + $0x28] sm:$0xff]  ;;  %v304_v10 = vld [vmem:[#allocation2 + $0x30] sm:$0xff]  ;;  %v307_v12 = vld [vmem:[#allocation2 + $0x38] sm:$0xff]  ;;  %198 = vset.pattern.permute.xlu0 %v260_v41 }
   0x8   :  { %v38_v5 = vadd.f32 %v37_v3, %v291_v2  ;;  %v100_v63 = vld [vmem:[%s348_s1] sm:$0xff]  ;;  %s263_s1 = smov [#allocation5]  }
   0xa   :  { %v39_v7 = vadd.f32 %v38_v5, %v295_v4 }
   0xc   :  { %v40_v9 = vadd.f32 %v39_v7, %v298_v6 }
   0xe   :  { %v41_v11 = vadd.f32 %v40_v9, %v301_v8  ;;  %v101_v9 = vld [vmem:[%s349_s2] sm:$0xff]  ;;  %s176_s2 = sshll.u32 %s263_s1, 4  ;;  %s177_s2 = int_to_ptr.vmem [resolvable:$true] %s176_s2 }
  0x10   :  { %v42_v13 = vadd.f32 %v41_v11, %v304_v10 }
  0x12   :  { %v43_v14 = vadd.f32 %v42_v13, %v307_v12 }
  0x14   :  { %44 = vadd.xlane.f32.xlu0 %v43_v14  ;;  %v261_v14 = vmov 3  }
  0x87   :  { %v45_v15 = vpop.xlane.xlu0 %44 }
  0x88   :  { %v311_v16 = vmul.f32 0.0009765625, %v45_v15  ;;  %v262_v15 = vmov 1  }
  0x8a   :  { %v47_v17 = vsub.f32 %v287_v0, %v311_v16  ;;  %v48_v18 = vsub.f32 %v289_v1, %v311_v16  ;;  %v49_v19 = vsub.f32 %v291_v2, %v311_v16  ;;  %v50_v20 = vsub.f32 %v295_v4, %v311_v16 }
  0x8b   :  { %v51_v23 = vsub.f32 %v298_v6, %v311_v16  ;;  %v52_v26 = vsub.f32 %v301_v8, %v311_v16  ;;  %v53_v29 = vsub.f32 %v304_v10, %v311_v16  ;;  %v54_v32 = vsub.f32 %v307_v12, %v311_v16 }
  0x8c   :  { %v55_v21 = vmul.f32 %v47_v17, %v47_v17  ;;  %v56_v22 = vmul.f32 %v48_v18, %v48_v18  ;;  %v57_v24 = vmul.f32 %v49_v19, %v49_v19  ;;  %v58_v27 = vmul.f32 %v50_v20, %v50_v20 }
  0x8d   :  { %v59_v30 = vmul.f32 %v51_v23, %v51_v23  ;;  %v60_v33 = vmul.f32 %v52_v26, %v52_v26  ;;  %v61_v35 = vmul.f32 %v53_v29, %v53_v29  ;;  %v62_v37 = vmul.f32 %v54_v32, %v54_v32 }
  0x8e   :  { %v63_v25 = vadd.f32 %v56_v22, %v55_v21 }
  0x90   :  { %v64_v28 = vadd.f32 %v63_v25, %v57_v24 }
  0x92   :  { %v65_v31 = vadd.f32 %v64_v28, %v58_v27 }
  0x94   :  { %v66_v34 = vadd.f32 %v65_v31, %v59_v30 }
  0x96   :  { %v67_v36 = vadd.f32 %v66_v34, %v60_v33 }
  0x98   :  { %v68_v38 = vadd.f32 %v67_v36, %v61_v35 }
  0x9a   :  { %v69_v39 = vadd.f32 %v68_v38, %v62_v37 }
  0x9c   :  { %70 = vadd.xlane.f32.xlu0 %v69_v39 }
 0x10f   :  { %v71_v42 = vpop.xlane.xlu0 %70 }
 0x110   :  { %v72_v43 = vmul.f32 0.0009775171, %v71_v42 }
 0x112   :  { %202 = vrsqrt.f32 %v72_v43  ;;  %vm80_vm0 = vcmp.eq.f32.partialorder %v72_v43, inf  ;;  %v83_v51 = vand.u32 2147483648, %v72_v43  ;;  %vm82_vm1 = vcmp.eq.f32.partialorder %v72_v43, 0.0 }
 0x118   :  { %v203_v44 = vpop.eup %202 }
 0x119   :  { %v74_v45 = vmul.f32 %v203_v44, %v72_v43 }
 0x11b   :  { %v75_v46 = vmul.f32 %v203_v44, %v74_v45 }
 0x11d   :  { %v76_v47 = vmul.f32 0.5, %v75_v46 }
 0x11f   :  { %v77_v48 = vsub.f32 1.5, %v76_v47 }
 0x121   :  { %v78_v49 = vmul.f32 %v203_v44, %v77_v48 }
 0x123   :  { %v79_v50 = vmul.f32 %v78_v49, %v72_v43 }
 0x125   :  { %v81_v52 = vsel %vm80_vm0, %v72_v43, %v79_v50 }
 0x126   :  { %v84_v53 = vsel %vm82_vm1, %v83_v51, %v81_v52 }
 0x127   :  { %v85_v54 = vadd.f32 1e-10, %v84_v53 }
 0x129   :  { %204 = vrcp.f32 %v85_v54  ;;  %v97_v58 = vand.u32 2147483648, %v85_v54  ;;  %v95_v60 = vand.u32 2147483647, %v85_v54  ;;  %vm91_vm3 = vweird.f32 %v85_v54 }
 0x12b   :  { %v98_v62 = vor.u32 1.1754944e-38, %v97_v58  ;;  %vm96_vm5 = vcmp.eq.f32.partialorder %v95_v60, 8.507059e+37 }
 0x12f   :  { %v205_v55 = vpop.eup %204 }
 0x130   :  { %v87_v56 = vmul.f32 %v205_v55, %v85_v54  ;;  %vm92_vm2 = vweird.f32 %v205_v55 }
 0x131   :  { %vm93_vm4 = vmor %vm91_vm3, %vm92_vm2 }
 0x132   :  { %v88_v57 = vsub.f32 1.0, %v87_v56 }
 0x134   :  { %v89_v59 = vmul.f32 %v205_v55, %v88_v57 }
 0x136   :  { %v90_v61 = vadd.f32 %v205_v55, %v89_v59 }
 0x138   :  { %v94_v3 = vsel %vm93_vm4, %v205_v55, %v90_v61 }
 0x139   :  { %v99_v5 = vsel %vm96_vm5, %v98_v62, %v94_v3 }
 0x13a   :  { %v102_v7 = vmul.f32 %v100_v63, %v99_v5 }
 0x13c   :  { %142 = vperm.xlu2 %196, %v102_v7   ;;  %109 = vperm.xlu1 %194, %v102_v7   ;;  %v103_v11 = vmul.f32 %v102_v7, %v311_v16 }
 0x13e   :  { %v104_v13 = vsub.f32 %v101_v9, %v103_v11 }
 0x140   :  { %116 = vperm.xlu0 %198, %v104_v13  }
 0x144   :  { %197 = vset.pattern.permute.xlu2 %v261_v14  ;;  %195 = vset.pattern.permute.xlu1 %v262_v15 }
 0x145   :  { %158 = vperm.xlu2 %197, %v102_v7   ;;  %126 = vperm.xlu1 %195, %v102_v7  }
 0x148   :  { %201 = vset.pattern.permute.xlu0 %v261_v14 }
 0x14d   :  { %199 = vset.pattern.permute.xlu2 %v259_v40  ;;  %132 = vperm.xlu1 %195, %v104_v13  }
 0x14e   :  { %148 = vperm.xlu2 %199, %v104_v13  }
 0x155   :  { %200 = vset.pattern.permute.xlu1 %v261_v14 }
 0x156   :  { %164 = vperm.xlu1 %200, %v104_v13  }
 0x196   :  { %v143_v17 = vpop.permute.xlu2 %142 }
 0x197   :  { %v145_v19 = vmul.f32 %v143_v17, %v298_v6  ;;  %v146_v16 = vmul.f32 %v143_v17, %v301_v8 }
 0x19f   :  { %v159_v18 = vpop.permute.xlu2 %158 }
 0x1a0   :  { %v161_v33 = vmul.f32 %v159_v18, %v304_v10 }
 0x1a8   :  { %v149_v20 = vpop.permute.xlu2 %148 }
 0x1a9   :  { %v151_v21 = vadd.f32 %v149_v20, %v145_v19  ;;  %v152_v22 = vadd.f32 %v149_v20, %v146_v16 }
 0x1ab   :  { %153 = vst [vmem:[#allocation5 + $0x20] sm:$0xff] %v151_v21 }
 0x1ac   :  { %154 = vst [vmem:[#allocation5 + $0x28] sm:$0xff] %v152_v22 }
 0x1ae   :  { %v110_v23 = vpop.permute.xlu1 %109 }
 0x1af   :  { %v112_v24 = vmul.f32 %v110_v23, %v287_v0  ;;  %v113_v25 = vmul.f32 %v110_v23, %v289_v1  ;;  %v162_v0 = vmul.f32 %v159_v18, %v307_v12 }
 0x1b2   :  { %v117_v26 = vpop.permute.xlu0 %116 }
 0x1b3   :  { %v119_v27 = vadd.f32 %v117_v26, %v112_v24  ;;  %v120_v28 = vadd.f32 %v117_v26, %v113_v25 }
 0x1b5   :  { %121 = vst [vmem:[#allocation5] sm:$0xff] %v119_v27 }
 0x1b6   :  { %122 = vst [vmem:[#allocation5 + $0x8] sm:$0xff] %v120_v28 }
 0x1b7   :  { %v127_v29 = vpop.permute.xlu1 %126 }
 0x1b8   :  { %v129_v6 = vmul.f32 %v127_v29, %v291_v2  ;;  %v130_v8 = vmul.f32 %v127_v29, %v295_v4 }
 0x1bf   :  { %v133_v30 = vpop.permute.xlu1 %132 }
 0x1c0   :  { %v135_v31 = vadd.f32 %v133_v30, %v129_v6  ;;  %v136_v32 = vadd.f32 %v133_v30, %v130_v8 }
 0x1c2   :  { %137 = vst [vmem:[#allocation5 + $0x10] sm:$0xff] %v135_v31 }
 0x1c3   :  { %138 = vst [vmem:[#allocation5 + $0x18] sm:$0xff] %v136_v32 }
 0x1c8   :  { %v165_v1 = vpop.permute.xlu1 %164 }
 0x1c9   :  { %v167_v34 = vadd.f32 %v165_v1, %v161_v33  ;;  %v168_v2 = vadd.f32 %v165_v1, %v162_v0 }
 0x1cb   :  { %169 = vst [vmem:[#allocation5 + $0x30] sm:$0xff] %v167_v34 }
 0x1cc   :  { %170 = vst [vmem:[#allocation5 + $0x38] sm:$0xff] %v168_v2 }
 0x1cd   :  { %181 = dma.vmem_to_hbm [thread:$0]  %s177_s2, 1024, %s179_s22, [#allocation4]  }
 0x1ce   :  { %256 = dma.done.wait [#allocation4], 1024  }
 0x1cf   :  { %257 = vsyncadd [#allocation4], 4294966272 }
 0x1d0   :  { %186 = vsyncpa [#allocation3], 1 }
 0x1d1   :  { %187 = vsyncpa [#allocation4], 1 }

</bundles_post_ra>
